<compile_context>
chip_gen: v7x
topology: tpu7x:2x2x1
jax: 0.10.0
libtpu: 0.0.40
codegen_flags: <defaults>
</compile_context>

<pallas_src>
import math

import jax
import jax.numpy as jnp
from jax.experimental import pallas as pl
from jax.experimental.pallas import tpu as pltpu


_LANES = 128
_MAX_LANES = 512
_ROW_BLOCK_BUDGET = 1 << 20      # ~1 MiB per (TR, L) embedding row slab
_MIN_KERNEL_BYTES = 1 << 20      # below this, the XLA-fused broadcast wins


def _broadcast_kernel(emb_ref, out_ref):
    # emb_ref: (TR, L) tile of the embedding table
    # out_ref: (TB, TR, L) output block -- the tile replicated over TB batch rows
    out_ref[...] = jnp.broadcast_to(emb_ref[...], out_ref.shape)


def _vmem_capacity_bytes() -> int:
    try:
        return int(pltpu.get_tpu_info().vmem_capacity_bytes)
    except Exception:
        return 64 << 20          # conservative fallback (v7x per-TC VMEM)


def _sublane_pack(itemsize: int) -> int:
    # Rows per native (8,128)x32-bit tile: f32 -> 8, bf16 -> 16, int8/fp8 -> 32.
    return max(8, (8 * 4) // max(1, itemsize))


def _pick_lane_width(total: int) -> int:
    """Largest multiple of 128 (<= _MAX_LANES) that divides `total`; 0 if none."""
    best = 0
    lanes = _LANES
    while lanes <= _MAX_LANES:
        if total % lanes == 0:
            best = lanes
        lanes += _LANES
    return best


def trainable_position_encoding_forward(
    pos_embs: jax.Array,
    batch_size: int,
    *,
    min_kernel_bytes: int = _MIN_KERNEL_BYTES,
) -> jax.Array:
    """Replicates pos_embs (*index_dims, C) across a new leading batch axis.

    Returns an array of shape (batch_size, *index_dims, C).
    """
    index_dims = pos_embs.shape[:-1]
    num_channels = pos_embs.shape[-1]
    out_shape = (batch_size,) + index_dims + (num_channels,)

    seq = int(math.prod(index_dims)) if index_dims else 1
    total = seq * num_channels
    itemsize = jnp.dtype(pos_embs.dtype).itemsize
    out_bytes = batch_size * total * itemsize

    # Fast path: for tiny outputs a kernel launch costs more than the fused broadcast.
    if out_bytes < min_kernel_bytes:
        return jnp.broadcast_to(pos_embs[None, ...], out_shape)

    # Lane-dense layout when possible: refold onto a wide multiple-of-128 lane
    # axis so every store is a full, unmasked vst row.
    lanes = _pick_lane_width(total)
    if lanes:
        rows = total // lanes
    else:
        # TODO(synk): for channel counts not a multiple of 128, padding the stored
        # parameter to 128 lanes at init would avoid masked vst.msk stores here.
        lanes = num_channels
        rows = seq
    emb2d = pos_embs.reshape(rows, lanes)

    vmem_cap = _vmem_capacity_bytes()
    out_block_budget = (8 << 20) if vmem_cap >= (96 << 20) else (4 << 20)

    pack = _sublane_pack(itemsize)
    row_bytes = lanes * itemsize
    budget_rows = max(1, _ROW_BLOCK_BUDGET // row_bytes)
    tr = min(rows, max(pack, (budget_rows // pack) * pack))   # full extent if >= rows

    batch_row_bytes = tr * row_bytes
    tb = max(1, min(batch_size, out_block_budget // max(1, batch_row_bytes)))

    # Megacore: make sure there are >= 2 blocks (when possible) so both
    # TensorCores on v7x / both megacore halves get work.
    if pl.cdiv(rows, tr) * pl.cdiv(batch_size, tb) < 2 and batch_size >= 2:
        tb = pl.cdiv(batch_size, 2)

    # rows outer (slow), batch inner (fast): the input block index is constant
    # across the fast axis, so the table tile is DMA'd from HBM only once per
    # row block (no re-reads per batch block).
    grid = (pl.cdiv(rows, tr), pl.cdiv(batch_size, tb))

    in_block_bytes = tr * lanes * itemsize
    out_block_bytes = tb * tr * lanes * itemsize
    vmem_limit = 2 * (in_block_bytes + out_block_bytes) + (2 << 20)
    vmem_limit = int(min(max(vmem_limit, 16 << 20), (vmem_cap * 3) // 4))

    table_bytes = rows * lanes * itemsize   # read exactly once

    out = pl.pallas_call(
        _broadcast_kernel,
        out_shape=jax.ShapeDtypeStruct((batch_size, rows, lanes), pos_embs.dtype),
        grid=grid,
        in_specs=[pl.BlockSpec((tr, lanes), lambda r, b: (r, 0))],
        out_specs=pl.BlockSpec((tb, tr, lanes), lambda r, b: (b, r, 0)),
        compiler_params=pltpu.CompilerParams(
            dimension_semantics=("parallel", "parallel"),
            vmem_limit_bytes=vmem_limit,
        ),
        cost_estimate=pl.CostEstimate(
            flops=0,
            transcendentals=0,
            bytes_accessed=int(out_bytes + table_bytes),
        ),
    )(emb2d)

    return out.reshape(out_shape)


class TrainablePositionEncodingPallas:
    """JAX/Pallas port of TrainablePositionEncoding.

    Parameters are initialized deterministically in-script:
        pos_embs = randn(*index_dims, num_channels) * init_scale
    """

    def __init__(self, index_dims, num_channels=128, init_scale=0.02, key=None,
                 min_kernel_bytes=_MIN_KERNEL_BYTES):
        if key is None:
            key = jax.random.PRNGKey(0)
        self.index_dims = tuple(index_dims)
        self.num_channels = num_channels
        self.output_size = num_channels
        self.min_kernel_bytes = min_kernel_bytes
        self.pos_embs = (
            jax.random.normal(key, self.index_dims + (num_channels,), dtype=jnp.float32)
            * init_scale
        )

    def __call__(self, batch_size: int, pos=None) -> jax.Array:
        # `pos` is unused in the reference forward as well.
        # Note: batch_size is a Python int baked into grid/out_shape, so a new
        # batch size triggers a recompile (matches the shape-dependent expand).
        return trainable_position_encoding_forward(
            self.pos_embs, batch_size, min_kernel_bytes=self.min_kernel_bytes
        )


if __name__ == "__main__":
    key = jax.random.PRNGKey(0)

    # Small shapes consistent with the module: index_dims=(8,), num_channels=32.
    batch_size = 2
    index_dims = (8,)
    num_channels = 32

    # min_kernel_bytes=0 forces the Pallas kernel even at this tiny test shape.
    module = TrainablePositionEncodingPallas(
        index_dims=index_dims, num_channels=num_channels, init_scale=0.02,
        key=key, min_kernel_bytes=0,
    )

    out = jax.block_until_ready(module(batch_size))

    # Reference: plain JAX broadcast (mirrors torch unsqueeze+expand).
    ref = jnp.broadcast_to(
        module.pos_embs[None, ...], (batch_size,) + index_dims + (num_channels,)
    )
    assert out.shape == (batch_size,) + index_dims + (num_channels,), out.shape
    assert out.dtype == module.pos_embs.dtype
    assert jnp.array_equal(out, ref), "Pallas output mismatch vs reference broadcast"

    # Non-lane-dense fallback (seq*C not a multiple of 128) through the kernel.
    emb_odd = jax.random.normal(jax.random.PRNGKey(1), (5, 24), dtype=jnp.float32) * 0.02
    out_odd = jax.block_until_ready(
        trainable_position_encoding_forward(emb_odd, 3, min_kernel_bytes=0)
    )
    assert jnp.array_equal(out_odd, jnp.broadcast_to(emb_odd[None], (3, 5, 24)))

    # Ragged cdiv tiling: batch that does not divide the chosen batch tile,
    # multi-dim index_dims, lane-dense refold to a 512-wide lane axis.
    emb_big = jax.random.normal(
        jax.random.PRNGKey(2), (13, 40, 128), dtype=jnp.float32) * 0.02
    out_big = jax.block_until_ready(
        trainable_position_encoding_forward(emb_big, 3, min_kernel_bytes=0)
    )
    assert jnp.array_equal(out_big, jnp.broadcast_to(emb_big[None], (3, 13, 40, 128)))

    # Default fast path (tiny output bypasses the kernel via XLA broadcast).
    fast = jax.block_until_ready(
        trainable_position_encoding_forward(module.pos_embs, batch_size)
    )
    assert jnp.array_equal(fast, ref)

    print("KERNEL_OK")
</pallas_src>

<mosaic_0001>
module attributes {stable_mosaic.version = 11 : i64} {
  func.func @_broadcast_kernel(%arg0: i32, %arg1: i32, %arg2: memref<1x256xf32, #tpu.memory_space<vmem>>, %arg3: memref<1x1x256xf32, #tpu.memory_space<vmem>>) attributes {dimension_semantics = [#tpu.dimension_semantics<parallel>, #tpu.dimension_semantics<parallel>], iteration_bounds = array<i64: 1, 2>, scalar_prefetch = 0 : i64, scratch_operands = 0 : i64, tpu.core_type = #tpu.core_type<tc>, window_params = [{transform_indices = @transform_0, window_bounds = array<i64: 1, 256>}, {transform_indices = @transform_1, window_bounds = array<i64: 1, 1, 256>}]} {
    %c0 = arith.constant 0 : index
    %c0_0 = arith.constant 0 : index
    %0 = vector.load %arg2[%c0, %c0_0] : memref<1x256xf32, #tpu.memory_space<vmem>>, vector<1x256xf32>
    %1 = vector.shape_cast %0 : vector<1x256xf32> to vector<1x1x256xf32>
    %c0_1 = arith.constant 0 : index
    %c0_2 = arith.constant 0 : index
    %c0_3 = arith.constant 0 : index
    %2 = vector.load %arg3[%c0_1, %c0_2, %c0_3] : memref<1x1x256xf32, #tpu.memory_space<vmem>>, vector<1x1x256xf32>
    tpu.vector_store %arg3[%c0_1, %c0_2, %c0_3], %1 {strides = array<i32>} : memref<1x1x256xf32, #tpu.memory_space<vmem>>, vector<1x1x256xf32>,
    return
  }
  func.func @transform_0(%arg0: i32, %arg1: i32) -> (i32, i32) {
    %c0_i32 = arith.constant 0 : i32
    %c0_i32_0 = arith.constant 0 : i32
    return %arg0, %c0_i32 : i32, i32
  }
  func.func @transform_1(%arg0: i32, %arg1: i32) -> (i32, i32, i32) {
    %c0_i32 = arith.constant 0 : i32
    %c0_i32_0 = arith.constant 0 : i32
    return %arg1, %arg0, %c0_i32 : i32, i32, i32
  }
}

</mosaic_0001>

<bundles_post_ra>
// kernel: tpu_custom_call.1
= control target key start
LH: loop header
LB: loop body
LE: loop exit
PB: predicated region body
PF: predicated region fallthrough
CT: control target
= control target key end

     0   :  { %6 = vsyncpa [#allocation3], 0  ;;  %s573_s0 = inlined_call_operand.hbm [shape: f32[1,256], index: 0, kind: input, shape index: {}]   ;;  %s574_s1 = inlined_call_operand.hbm [shape: f32[2,1,256], index: 1, kind: output, shape index: {}]  }
   0x1   :  { %7 = vsyncpa [#allocation4], 0 }
   0x2   :  { %9 = vsyncpa [#allocation4 + $0x1], 0  ;;  %s428_s6 = smov 0   ;;  %s430_s7 = smov 0  }
   0x3   :  { %s432_s8 = smov 0   ;;  %s434_s9 = smov 0  }
   0x4   :  { %s436_s10 = smov 0   ;;  %s438_s11 = smov 0  }
   0x5 LB: > { %s225_s12 = sadd.s32 4294967295, %s414_s11   ;;  %s226_s13 = sadd.s32 4294967294, %s414_s11   ;;  %s414_s11 = sphi %s438_s11, %s15_s11   ;;  %s410_s10 = sphi %s436_s10, %s592_s10   ;;  %s406_s9 = sphi %s434_s9, %s591_s9   ;;  %s402_s8 = sphi %s432_s8, %s590_s8   ;;  %s398_s7 = sphi %s430_s7, %s589_s7   ;;  %s394_s6 = sphi %s428_s6, %s588_s6  }
   0x6   : > { %s24_s14 = sadd.s32 1, %s410_s10  ;;  %s62_s15 = sadd.s32 1, %s402_s8 }
   0x7   : > { %p25_p0 = scmp.ge.s32.totalorder %s24_s14, 2  ;;  %p72_p1 = scmp.ne.s32.totalorder %s402_s8, %s398_s7 }
   0x8   : > { %p73_p2 = scmp.eq.s32.totalorder %s225_s12, 1  ;;  %p78_p3 = scmp.ne.s32.totalorder %s398_s7, %s394_s6 }
   0x9   : > { %s594_s14 = smov (%p25_p0, %s24_s14), 0  ;;  %p79_p5 = scmp.eq.s32.totalorder %s226_s13, 1 }
   0xa   : > { %p468_p4 = por %p73_p2, %p72_p1  ;;  %s57_s17 = ssub.s32 %s410_s10, %s594_s14 }
   0xb   : > { %p227_p6 = scmp.ge.s32.totalorder %s414_s11, 1  ;;  %p60_p7 = scmp.eq.s32.totalorder %s57_s17, 0 }
   0xc   : > { %s579_s16 = scalar_select %p468_p4, 1, 0 }
   0xd   : > { %p475_p8 = por %p79_p5, %p78_p3  ;;  %p86_p9 = scmp.lt.s32.totalorder %s414_s11, 3 }
   0xe   : > { %s481_s19 = scalar_select %p60_p7, %s402_s8, %s62_s15  }
   0xf   : > { %s580_s18 = scalar_select %p475_p8, 1, 0 }
  0x10   : > { %p483_p10 = pnand %p227_p6, %p86_p9  ;;  %p487_p11 = scmp.eq.s32.totalorder %s225_s12, 0 }
  0x11   : > { %s416_s22 = smov [#allocation2]   ;;  %s304_s27 = scalar_lea.hbm %s573_s0, 32 }
  0x12   : > { %s581_s20 = scalar_select %p483_p10, 1, 0 }
  0x13   : > { %s582_s21 = scalar_select %p487_p11, 1, 0 }
  0x14   : > { %p244_p12 = pneg %p483_p10  ;;  %s102_s23 = sshll.u32 %s416_s22, 4  ;;  %s103_s23 = int_to_ptr.vmem [resolvable:$true] %s102_s23 }
  0x15   : > { %p305_p0 = scmp.ne.s32.totalorder %s573_s0, %s304_s27  ;;  %p311_p5 = scmp.lt.u32.totalorder %s304_s27, %s573_s0 }
  0x16   : > { %p495_p13 = pnand %p487_p11, %p244_p12 }
  0x18   : > { %p306_p1 = pneg %p495_p13 }
  0x1a   : > { %p307_p2 = pnand %p306_p1, %p305_p0 }
  0x1c   : > { %p308_p3 = pneg %p307_p2 }
  0x1e   : > { %p313_p6 = pnand %p311_p5, %p308_p3 }
  0x20   : > { %316 = shalt.err (!%p313_p6)
}
  0x21   : > { %s317_s3 = scalar_lea.vmem %s103_s23, 32  ;;  %p325_p8 = scmp.lt.s32.totalorder %s103_s23, %s103_s23 }
  0x22   : > { %p318_p7 = scmp.ne.s32.totalorder %s103_s23, %s317_s3  ;;  %p326_p4 = scmp.lt.s32.totalorder %s317_s3, %s317_s3 }
  0x24   : > { %p320_p9 = pnand %p318_p7, %p306_p1  ;;  %p327_p11 = por %p326_p4, %p325_p8 }
  0x26   : > { %p321_p12 = pneg %p320_p9 }
  0x28   : > { %p328_p10 = pnand %p327_p11, %p321_p12 }
  0x2a   : > { %331 = shalt.err (!%p328_p10)
}
  0x2b   : > { %247 = dma.hbm_to_vmem [thread:$0]  (!%p495_p13), %s573_s0, 32, %s103_s23, [#allocation3]  }
  0x2c   : > { %p584_p0 = scmp.ne.s32.totalorder %s581_s20, 0 }
  0x2d   : > { %p585_p2 = scmp.ne.s32.totalorder (!%p584_p0), %s582_s21, 0 }
  0x2e   : > { %115 = sbr.rel (%p584_p0) target bundleno = 80 (0x50), region = 24 }
  0x35   : > { %385 = dma.done.wait (%p585_p2), [#allocation3], 32  }
  0x36   : > { %387 = vsyncadd (%p585_p2), [#allocation3], 4294967264  ;;  %s127_s12 = sand.u32 1, %s398_s7   ;;  %v131_v0 = vlaneseq  ;;  %s237_s22 = sshll.u32 %s406_s9, 5  ;;  %v130_v1 = vld [vmem:[#allocation2] sm:$0x3] }
  0x37   : > { %s231_s13 = sshll.u32 %s127_s12, 1  ;;  %s528_s21 = scalar_lea.hbm %s574_s1, %s237_s22 }
  0x38   : > { %s129_s15 = scalar_lea.vmem [#allocation5], %s231_s13  ;;  %vm133_vm0 = vcmp.lt.s32.totalorder %v131_v0, 256  ;;  %s137_s24 = scalar_lea.sflag [#allocation4], %s127_s12 }
  0x39   : > { %s153_s17 = sshll.u32 %s129_s15, 4  ;;  %135 = vst.msk [vmem:[%s129_s15] sm:$0x3] %vm133_vm0, %v130_v1  ;;  %p586_p8 = scmp.ne.s32.totalorder %s579_s16, 0  ;;  %s523_s17 = int_to_ptr.vmem [resolvable:$true] %s153_s17 }
  0x3a   : > { %s332_s25 = scalar_lea.vmem %s523_s17, 32  ;;  %s417_s9 = smov [#allocation5]  }
  0x3b   : > { %p333_p4 = scmp.ne.s32.totalorder %s523_s17, %s332_s25  ;;  %s336_s26 = sshll.u32 %s417_s9, 4  ;;  %s337_s26 = int_to_ptr.vmem [resolvable:$false] %s336_s26 }
  0x3c   : > { %s338_s27 = scalar_lea.vmem %s337_s26, 64  ;;  %p339_p13 = scmp.lt.s32.totalorder %s523_s17, %s337_s26 }
  0x3d   : > { %p334_p10 = pnand %p333_p4, %p586_p8  ;;  %p340_p1 = scmp.lt.s32.totalorder %s338_s27, %s332_s25 }
  0x3f   : > { %p335_p11 = pneg %p334_p10  ;;  %p341_p3 = por %p340_p1, %p339_p13 }
  0x41   : > { %p342_p5 = pnand %p341_p3, %p335_p11 }
  0x43   : > { %345 = shalt.err (!%p342_p5)
}
  0x44   : > { %s346_s28 = scalar_lea.hbm %s528_s21, 32  ;;  %s350_s2 = scalar_lea.hbm %s574_s1, 64 }
  0x45   : > { %p347_p6 = scmp.ne.s32.totalorder %s528_s21, %s346_s28  ;;  %p351_p12 = scmp.lt.u32.totalorder %s528_s21, %s574_s1 }
  0x46   : > { %p352_p0 = scmp.lt.u32.totalorder %s350_s2, %s346_s28  ;;  %p354_p4 = scmp.lt.u32.totalorder %s346_s28, %s528_s21 }
  0x47   : > { %p348_p7 = pnand %p347_p6, %p586_p8 }
  0x48   : > { %p353_p2 = por %p352_p0, %p351_p12 }
  0x49   : > { %p349_p9 = pneg %p348_p7 }
  0x4a   : > { %p355_p10 = por %p354_p4, %p353_p2 }
  0x4c   : > { %p356_p11 = pnand %p355_p10, %p349_p9 }
  0x4e   : > { %359 = shalt.err (!%p356_p11)
}
  0x4f   : > { %242 = dma.vmem_to_hbm [thread:$0]  (%p586_p8), %s523_s17, 32, %s528_s21, %s137_s24  }
  0x50 PF: > { %p254_p13 = scmp.ge.s32.totalorder %s414_s11, 2  ;;  %s165_s5 = sand.u32 1, %s394_s6  }
  0x51   : > { %p587_p1 = scmp.ne.s32.totalorder %s580_s18, 0  ;;  %s166_s12 = scalar_lea.sflag [#allocation4], %s165_s5 }
  0x53   : > { %p249_p3 = pnand %p254_p13, %p587_p1 }
  0x55   : > { %389 = dma.done.wait (!%p249_p3), %s166_s12, 32  }
  0x56   : > { %391 = vsyncadd (!%p249_p3), %s166_s12, 4294967264  ;;  %s15_s11 = sadd.s32 1, %s414_s11   ;;  %s588_s6 = smov %s398_s7 }
  0x57   : > { %p12_p5 = scmp.ge.s32.totalorder %s15_s11, 4   ;;  %s589_s7 = smov %s402_s8 }
  0x58   : > { %s590_s8 = smov %s481_s19  ;;  %s591_s9 = smov %s410_s10 }
  0x59   : > { %s592_s10 = smov %s594_s14  ;;  %14 = sbr.rel (!%p12_p5) target bundleno = 5 (0x5), region = 62 }
  0x60   :  { %171 = vsyncpa [#allocation3], 1 }
  0x61   :  { %173 = vsyncpa [#allocation3 + $0x1], 1 }
  0x62   :  { %174 = vsyncpa [#allocation4], 1 }
  0x63   :  { %176 = vsyncpa [#allocation4 + $0x1], 1 }

</bundles_post_ra>
